<compile_context>
chip_gen: v5e
topology: v5e:2x2
jax: 0.10.0
libtpu: 0.0.40
codegen_flags: <defaults>
</compile_context>

<pallas_src>
import functools

import jax
import jax.numpy as jnp
from jax import lax
from jax.experimental import pallas as pl
from jax.experimental.pallas import tpu as pltpu

_LANE = 128


def _round_up(n, m):
    return ((n + m - 1) // m) * m


# ---------------------------------------------------------------------------
# Fused kernel (small configs): one gridless call, all layers chained in-body.
# refs = (x, w0, b0, ..., w_{L-1}, b_{L-1}, out); all full-array VMEM blocks.
# ---------------------------------------------------------------------------
def _fused_mlp_kernel(*refs, n_layers):
    x_ref, o_ref = refs[0], refs[-1]
    wb = refs[1:-1]

    h = x_ref[...]                                      # (1, in_f) bf16
    for i in range(n_layers):
        w = wb[2 * i][...]                              # (fi, fo) bf16
        b = wb[2 * i + 1][...]                          # (1, fo)  f32
        h = jnp.dot(h, w, preferred_element_type=jnp.float32) + b
        if i != n_layers - 1:
            # Dropout (eval) == identity; only ReLU on hidden layers.
            h = jnp.maximum(h, 0.0).astype(jnp.bfloat16)
    o_ref[...] = h.astype(o_ref.dtype)


# ---------------------------------------------------------------------------
# Streamed kernel (large in_features): K-tiled first layer + fused tail.
# refs = (x, w0_t, b0, w1, b1, ..., out, acc)
#   x    : (1, Tk)  bf16 tile of the flattened input
#   w0_t : (H1, Tk) bf16 tile -- first-layer weight stored K-on-lanes
#   acc  : (1, H1)  f32 VMEM accumulator (persists across the K grid)
# ---------------------------------------------------------------------------
def _streamed_mlp_kernel(*refs, n_layers):
    x_ref, w0_ref = refs[0], refs[1]
    o_ref, acc_ref = refs[-2], refs[-1]
    rest = refs[2:-2]                                   # (b0, w1, b1, ...)

    k = pl.program_id(0)

    @pl.when(k == 0)
    def _():
        acc_ref[...] = jnp.zeros_like(acc_ref)

    # (1, Tk) . (H1, Tk)^T -> (1, H1): contract the lane (K) dim of both.
    acc_ref[...] += lax.dot_general(
        x_ref[...], w0_ref[...],
        dimension_numbers=(((1,), (1,)), ((), ())),
        preferred_element_type=jnp.float32)

    @pl.when(k == pl.num_programs(0) - 1)
    def _():
        h = acc_ref[...] + rest[0][...]                 # + b0 (f32)
        for i in range(1, n_layers):
            h = jnp.maximum(h, 0.0).astype(jnp.bfloat16)
            w = rest[2 * i - 1][...]                    # (fi, fo) bf16
            b = rest[2 * i][...]                        # (1, fo)  f32
            h = jnp.dot(h, w, preferred_element_type=jnp.float32) + b
        o_ref[...] = h.astype(o_ref.dtype)


# ---------------------------------------------------------------------------
# Factory: prepares parameters ONCE and returns a jitted forward(confuse_matrix)
# ---------------------------------------------------------------------------
def make_weight_mlp_forward(params, *, tk=None, force_stream=False,
                            fused_weight_bytes_limit=8 * 1024 * 1024):
    """params: list of (w, b), w: (in_f, out_f) (transpose of nn.Linear.weight),
    b: (out_f,) or (1, out_f). Casting / layout is done once, not per call."""
    n_layers = len(params)
    in_f = int(params[0][0].shape[0])
    h1 = int(params[0][0].shape[1])
    out_f = int(params[-1][0].shape[1])

    # --- one-time prep: bf16 weights (halves DMA bytes), f32 biases ---
    w_bf16 = [jnp.asarray(w, jnp.bfloat16) for (w, _) in params]
    b_f32 = [jnp.asarray(b, jnp.float32).reshape(1, -1) for (_, b) in params]

    total_w_bytes = sum(int(w.size) * 2 for w in w_bf16)
    total_b_bytes = sum(int(b.size) * 4 for b in b_f32)
    cost = pl.CostEstimate(
        flops=2 * sum(int(w.shape[0]) * int(w.shape[1]) for (w, _) in params),
        transcendentals=0,
        bytes_accessed=total_w_bytes + total_b_bytes + in_f * 2 + out_f * 4)

    stream = force_stream or (total_w_bytes > fused_weight_bytes_limit)

    if not stream:
        # ------------------- fused, gridless path -------------------
        wb = []
        for w, b in zip(w_bf16, b_f32):
            wb += [w, b]
        wb = tuple(wb)

        kernel = functools.partial(_fused_mlp_kernel, n_layers=n_layers)
        vmem = pl.BlockSpec(memory_space=pltpu.MemorySpace.VMEM)

        def forward(confuse_matrix, wb_args):
            x = jnp.reshape(confuse_matrix, (1, in_f)).astype(jnp.bfloat16)
            return pl.pallas_call(
                kernel,
                out_shape=jax.ShapeDtypeStruct((1, out_f), jnp.float32),
                in_specs=[vmem] * (1 + len(wb_args)),
                out_specs=vmem,
                cost_estimate=cost,
            )(x, *wb_args)

        jitted = jax.jit(forward)
        return lambda confuse_matrix: jitted(confuse_matrix, wb)

    # ------------------- K-tiled streaming path -------------------
    if tk is None:
        # ~2 MiB of bf16 first-layer weight per grid step.
        tk = ((2 * 1024 * 1024) // (2 * h1)) // _LANE * _LANE
    tk = max(_LANE, (int(tk) // _LANE) * _LANE)
    k_pad = _round_up(in_f, tk)
    grid = (k_pad // tk,)

    # One-time layout: (H1, K) bf16 with K on lanes, zero-padded to a Tk multiple
    # (zero columns contribute nothing -> exact).
    w0_t = jnp.pad(w_bf16[0].T, ((0, 0), (0, k_pad - in_f)))
    rest = [b_f32[0]]
    for w, b in zip(w_bf16[1:], b_f32[1:]):
        rest += [w, b]
    rest = tuple(rest)

    kernel = functools.partial(_streamed_mlp_kernel, n_layers=n_layers)

    in_specs = ([pl.BlockSpec((1, tk), lambda k: (0, k)),
                 pl.BlockSpec((h1, tk), lambda k: (0, k))]
                + [pl.BlockSpec(r.shape, lambda k: (0, 0)) for r in rest])
    out_spec = pl.BlockSpec((1, out_f), lambda k: (0, 0))

    rest_bytes = sum(int(r.size) * r.dtype.itemsize for r in rest)
    vmem_needed = 2 * (h1 * tk * 2 + tk * 2) + rest_bytes + (h1 + out_f) * 4
    vmem_limit = min(max(2 * vmem_needed, 8 * 1024 * 1024) + 4 * 1024 * 1024,
                     32 * 1024 * 1024)

    def forward(confuse_matrix, w0t, rest_args):
        x = jnp.reshape(confuse_matrix, (1, in_f)).astype(jnp.bfloat16)
        if k_pad != in_f:
            x = jnp.pad(x, ((0, 0), (0, k_pad - in_f)))
        return pl.pallas_call(
            kernel,
            out_shape=jax.ShapeDtypeStruct((1, out_f), jnp.float32),
            grid_spec=pltpu.PrefetchScalarGridSpec(
                num_scalar_prefetch=0,
                grid=grid,
                in_specs=in_specs,
                out_specs=out_spec,
                scratch_shapes=[pltpu.VMEM((1, h1), jnp.float32)]),
            compiler_params=pltpu.CompilerParams(
                dimension_semantics=("arbitrary",),
                vmem_limit_bytes=vmem_limit),
            cost_estimate=cost,
        )(x, w0t, *rest_args)

    jitted = jax.jit(forward)
    return lambda confuse_matrix: jitted(confuse_matrix, w0_t, rest)


# ---------------------------------------------------------------------------
# Parameter init (matches PyTorch: xavier_normal_ weights, zero biases)
# ---------------------------------------------------------------------------
def init_weight_mlp_params(key, layer_num, node_list):
    assert layer_num == len(node_list), \
        "ERROR at Weight_MLP: Layer_num != len(node_list)"
    params = []
    for layer in range(layer_num - 1):
        fan_in, fan_out = node_list[layer], node_list[layer + 1]
        key, sub = jax.random.split(key)
        std = (2.0 / (fan_in + fan_out)) ** 0.5  # xavier_normal_, gain=1
        w = std * jax.random.normal(sub, (fan_in, fan_out), dtype=jnp.float32)
        b = jnp.zeros((1, fan_out), dtype=jnp.float32)
        params.append((w, b))
    return params


# ---------------------------------------------------------------------------
# Pure-JAX reference for correctness checking
# ---------------------------------------------------------------------------
def weight_mlp_reference(confuse_matrix, params):
    x = jnp.reshape(confuse_matrix, (1, -1)).astype(jnp.float32)
    n = len(params)
    for i, (w, b) in enumerate(params):
        x = x @ w + b
        if i != n - 1:
            x = jnp.maximum(x, 0.0)
    return x


if __name__ == "__main__":
    key = jax.random.PRNGKey(0)

    # --- small config: fully fused gridless path (8x8 confusion matrix) ---
    layer_num = 3
    node_list = [64, 32, 16]
    key, k_in, k_p = jax.random.split(key, 3)
    confuse_matrix = jax.random.uniform(k_in, (8, 8), dtype=jnp.float32)
    params = init_weight_mlp_params(k_p, layer_num, node_list)

    fwd = make_weight_mlp_forward(params)
    out = jax.block_until_ready(fwd(confuse_matrix))
    ref = weight_mlp_reference(confuse_matrix, params)
    assert out.shape == (1, node_list[-1]), out.shape
    assert jnp.allclose(out, ref, atol=3e-2, rtol=3e-2), (out, ref)

    # --- larger first layer: K-tiled streaming path (30x30 confusion matrix) ---
    layer_num2 = 3
    node_list2 = [900, 32, 16]
    key, k_in2, k_p2 = jax.random.split(key, 3)
    confuse_matrix2 = jax.random.uniform(k_in2, (30, 30), dtype=jnp.float32)
    params2 = init_weight_mlp_params(k_p2, layer_num2, node_list2)

    fwd2 = make_weight_mlp_forward(params2, tk=256, force_stream=True)
    out2 = jax.block_until_ready(fwd2(confuse_matrix2))
    ref2 = weight_mlp_reference(confuse_matrix2, params2)
    assert out2.shape == (1, node_list2[-1]), out2.shape
    assert jnp.allclose(out2, ref2, atol=3e-2, rtol=3e-2), (out2, ref2)

    print("KERNEL_OK")
</pallas_src>

<mosaic_0001>
module attributes {stable_mosaic.version = 11 : i64} {
  func.func @_fused_mlp_kernel(%arg0: memref<1x64xbf16, #tpu.memory_space<vmem>>, %arg1: memref<64x32xbf16, #tpu.memory_space<vmem>>, %arg2: memref<1x32xf32, #tpu.memory_space<vmem>>, %arg3: memref<32x16xbf16, #tpu.memory_space<vmem>>, %arg4: memref<1x16xf32, #tpu.memory_space<vmem>>, %arg5: memref<1x16xf32, #tpu.memory_space<vmem>>) attributes {dimension_semantics = [], scalar_prefetch = 0 : i64, scratch_operands = 0 : i64, tpu.core_type = #tpu.core_type<tc>} {
    %c0 = arith.constant 0 : index
    %c0_0 = arith.constant 0 : index
    %0 = vector.load %arg0[%c0, %c0_0] : memref<1x64xbf16, #tpu.memory_space<vmem>>, vector<1x64xbf16>
    %c0_1 = arith.constant 0 : index
    %c0_2 = arith.constant 0 : index
    %1 = vector.load %arg1[%c0_1, %c0_2] : memref<64x32xbf16, #tpu.memory_space<vmem>>, vector<64x32xbf16>
    %c0_3 = arith.constant 0 : index
    %c0_4 = arith.constant 0 : index
    %2 = vector.load %arg2[%c0_3, %c0_4] : memref<1x32xf32, #tpu.memory_space<vmem>>, vector<1x32xf32>
    %cst = arith.constant dense<0.000000e+00> : vector<1x32xf32>
    %3 = tpu.matmul %0, %1, %cst {dimension_numbers = #tpu.dot_dimension_numbers<[1], [0], [0], [1], [0, 0, 1, 1], [], []>} : vector<1x64xbf16>, vector<64x32xbf16>, vector<1x32xf32> -> vector<1x32xf32>
    %4 = arith.addf %3, %2 : vector<1x32xf32>
    %cst_5 = arith.constant 0.000000e+00 : f32
    %5 = vector.broadcast %cst_5 : f32 to vector<1x32xf32>
    %6 = arith.maximumf %4, %5 : vector<1x32xf32>
    %7 = arith.truncf %6 : vector<1x32xf32> to vector<1x32xbf16>
    %c0_6 = arith.constant 0 : index
    %c0_7 = arith.constant 0 : index
    %8 = vector.load %arg3[%c0_6, %c0_7] : memref<32x16xbf16, #tpu.memory_space<vmem>>, vector<32x16xbf16>
    %c0_8 = arith.constant 0 : index
    %c0_9 = arith.constant 0 : index
    %9 = vector.load %arg4[%c0_8, %c0_9] : memref<1x16xf32, #tpu.memory_space<vmem>>, vector<1x16xf32>
    %cst_10 = arith.constant dense<0.000000e+00> : vector<1x16xf32>
    %10 = tpu.matmul %7, %8, %cst_10 {dimension_numbers = #tpu.dot_dimension_numbers<[1], [0], [0], [1], [0, 0, 1, 1], [], []>} : vector<1x32xbf16>, vector<32x16xbf16>, vector<1x16xf32> -> vector<1x16xf32>
    %11 = arith.addf %10, %9 : vector<1x16xf32>
    %c0_11 = arith.constant 0 : index
    %c0_12 = arith.constant 0 : index
    %12 = vector.load %arg5[%c0_11, %c0_12] : memref<1x16xf32, #tpu.memory_space<vmem>>, vector<1x16xf32>
    tpu.vector_store %arg5[%c0_11, %c0_12], %11 {strides = array<i32>} : memref<1x16xf32, #tpu.memory_space<vmem>>, vector<1x16xf32>,
    return
  }
}

</mosaic_0001>

<bundles_post_ra>
// kernel: forward.1
= control target key start
LH: loop header
LB: loop body
LE: loop exit
PB: predicated region body
PF: predicated region fallthrough
CT: control target
= control target key end

     0   :  { %s247_s0 = inlined_call_operand.vmem [shape: bf16[1,64], index: 0, kind: input, shape index: {}]   ;;  %s248_s1 = inlined_call_operand.vmem [shape: bf16[64,32], index: 1, kind: input, shape index: {}]   ;;  %s249_s2 = inlined_call_operand.vmem [shape: f32[1,32], index: 2, kind: input, shape index: {}]   ;;  %s250_s3 = inlined_call_operand.vmem [shape: bf16[32,16], index: 3, kind: input, shape index: {}]   ;;  %s251_s4 = inlined_call_operand.vmem [shape: f32[1,16], index: 4, kind: input, shape index: {}]   ;;  %s252_s5 = inlined_call_operand.hbm [shape: f32[1,16], index: 5, kind: output, shape index: {}]  }
   0x1   :  { %v156_v0 = vld [vmem:[%s248_s1 + $0x18] sm:$0xff]  ;;  %v155_v1 = vld [vmem:[%s248_s1 + $0x10] sm:$0xff] }
   0x2   :  { %64 = vmatpush.bf16.msra.mxu0 %v156_v0 }
   0x3   :  { %10 = vsyncpa [#allocation3], 0  ;;  %v154_v2 = vld [vmem:[%s248_s1 + $0x8] sm:$0xff]  ;;  %v153_v3 = vld [vmem:[%s248_s1] sm:$0xff]  ;;  %vm56_vm0 = vcmask 523264   ;;  %vm92_vm1 = vcmask 261120  }
   0x4   :  { %v22_v4 = vld [vmem:[%s247_s0] sm:$0x1]  ;;  %v158_v5 = vld [vmem:[%s250_s3 + $0x8] sm:$0xff]  ;;  %s186_s9 = smov [#allocation2]   ;;  %s118_s12 = sshll.u32 %s252_s5, 4  ;;  %vm109_vm2 = vcmask 122880   ;;  %s119_s12 = int_to_ptr.hbm [resolvable:$true] %s118_s12 }
   0x5   :  { %102 = vmatpush.bf16.msra.mxu1 %v158_v5  ;;  %v157_v6 = vld [vmem:[%s250_s3] sm:$0xff]  ;;  %s116_s10 = sshll.u32 %s186_s9, 4  ;;  %s117_s10 = int_to_ptr.vmem [resolvable:$true] %s116_s10 }
   0x6   :  { %65 = vmatpush.bf16.msra.mxu0 %v155_v1  ;;  %v31_v7 = vld [vmem:[%s249_s2] sm:$0x1] }
   0x7   :  { %v79_v13 = vld [vmem:[%s251_s4] sm:$0x1] }
   0x9   :  { %103 = vmatpush.bf16.msra.mxu1 %v157_v6 }
   0xa   :  { %66 = vmatpush.bf16.msra.mxu0 %v154_v2 }
   0xe   :  { %67 = vmatpush.bf16.msra.mxu0 %v153_v3 }
  0x11   :  { %143 = vmatmul.msk.bf16.vlgmr.msra.gmra.mxu0 %vm56_vm0, %v22_v4 }
  0x8e   :  { %v69_v8 = vpop.f32.mrf.mxu0 }
  0x8f   :  { %v70_v9 = vadd.f32 %v69_v8, %v31_v7 }
  0x91   :  { %v73_v10 = vmax.f32 %v70_v9, 0.0 }
  0x93   :  { %v74_v11 = vpack.c.bf16 %v73_v10, %v73_v10 }
  0x95   :  { %152 = vmatmul.msk.bf16.vlgmr.msra.gmra.mxu1 %vm92_vm1, %v74_v11 }
  0x96   :  { %v71_v12 = vpop.f32.mrf.mxu0 }
 0x112   :  { %v105_v14 = vpop.f32.mrf.mxu1 }
 0x113   :  { %v106_v15 = vadd.f32 %v105_v14, %v79_v13 }
 0x115   :  { %110 = vst.msk [vmem:[#allocation2] sm:$0x1] %vm109_vm2, %v106_v15 }
 0x116   :  { %121 = dma.vmem_to_hbm [thread:$0]  %s117_s10, 16, %s119_s12, [#allocation3]  }
 0x11a   :  { %v107_v16 = vpop.f32.mrf.mxu1 }
 0x11b   :  { %184 = dma.done.wait [#allocation3], 16  }
 0x11c   :  { %185 = vsyncadd [#allocation3], 4294967280 }
 0x11d   :  { %126 = vsyncpa [#allocation3], 1 }

</bundles_post_ra>
